<compile_context>
chip_gen: v7x
topology: tpu7x:2x2x1
jax: 0.10.0
libtpu: 0.0.40
codegen_flags: <defaults>
</compile_context>

<pallas_src>
import jax
import jax.numpy as jnp
from jax.experimental import pallas as pl
from jax.experimental.pallas import tpu as pltpu

LANE = 128  # all head segments / contraction dims are zero-padded to this width


# ------------------------------ small helpers ---------------------------------

def _round_up(x, m):
    return ((x + m - 1) // m) * m


def _pad2(a, rows, cols):
    r, c = a.shape
    if r == rows and c == cols:
        return a
    return jnp.pad(a, ((0, rows - r), (0, cols - c)))


def _batch_tile(n):
    """(batch tile, padded batch). >=2 tiles when feasible so the 'parallel'
    batch axis can shard across v7x's two TensorCores."""
    n8 = _round_up(max(n, 8), 8)
    if n8 >= 256:
        tm = 128
    elif n8 >= 32:
        tm = _round_up((n8 + 1) // 2, 16)
    else:
        tm = n8
    return tm, _round_up(n8, tm)


def _queue_tile(k):
    """Queue-axis tile for the streamed l_neg matmul."""
    if k <= 2048:
        return k
    for tk in (2048, 1024, 512, 256, 128):
        if k % tk == 0:
            return tk
    # TODO(synk): pad the queue to a 128-multiple for exotic moco_queue sizes.
    return k


def _full(arr):
    """Whole-array resident BlockSpec for a 1-D grid (weights / biases / protos)."""
    return pl.BlockSpec(arr.shape, lambda i: (0,) * arr.ndim)


def _vmem_limit(*shaped):
    """Explicit VMEM budget: ~3x (resident operands + per-step tiles) with headroom,
    never below the 32 MiB scoped default, capped at v7x's 64 MiB physical VMEM."""
    nbytes = 0
    for shape, dtype in shaped:
        n = 1
        for s in shape:
            n *= int(s)
        nbytes += n * jnp.dtype(dtype).itemsize
    return int(min(64 << 20, max(32 << 20, 3 * nbytes + (2 << 20))))


# ------------------------------ Pallas kernels --------------------------------

def _make_encoder_q_kernel(cp, lp):
    """Eval-path query encoder: out / q / u / x_q (padded, lane-aligned widths)."""
    def kernel(x_ref, w1_ref, b1_ref, wh_ref, bh_ref,
               out_ref, q_ref, u_ref, xq_ref):
        h = jnp.maximum(
            jnp.dot(x_ref[...], w1_ref[...], preferred_element_type=jnp.float32)
            + b1_ref[...], 0.0)
        heads = jnp.dot(h.astype(jnp.bfloat16), wh_ref[...],
                        preferred_element_type=jnp.float32) + bh_ref[...]
        out_ref[...] = heads[:, :cp]                        # 128-aligned slice
        p = heads[:, cp:cp + lp]                            # 128-aligned slice
        q_ref[...] = p * jax.lax.rsqrt(
            jnp.maximum(jnp.sum(p * p, axis=-1, keepdims=True), 1e-24))
        u_ref[...] = jax.nn.sigmoid(heads[:, cp + lp:])     # 128-aligned slice
        xq_ref[...] = h
    return kernel


def _make_train_encoder_kernel(cp, lp, low_dim, inv_t, with_proto):
    """Training encoders: query + key (momentum) share one x-tile DMA.
    Produces out, u, x_q, q(bf16), k(bf16), l_pos and (optionally) logits_proto."""
    def kernel(*refs):
        if with_proto:
            (x_ref, w1q, b1q, whq, bhq, w1k, b1k, wpk, bpk, pt,
             out_ref, u_ref, xq_ref, qbf_ref, kbf_ref, lpos_ref, lproto_ref) = refs
        else:
            (x_ref, w1q, b1q, whq, bhq, w1k, b1k, wpk, bpk,
             out_ref, u_ref, xq_ref, qbf_ref, kbf_ref, lpos_ref) = refs
        x = x_ref[...]                                       # bf16 tile

        # ---- query encoder (fused wide head matmul) ----
        hq = jnp.maximum(
            jnp.dot(x, w1q[...], preferred_element_type=jnp.float32) + b1q[...], 0.0)
        heads = jnp.dot(hq.astype(jnp.bfloat16), whq[...],
                        preferred_element_type=jnp.float32) + bhq[...]
        out_ref[...] = heads[:, :cp]
        p = heads[:, cp:cp + lp]
        q = p * jax.lax.rsqrt(
            jnp.maximum(jnp.sum(p * p, axis=-1, keepdims=True), 1e-24))
        u_ref[...] = jax.nn.sigmoid(heads[:, cp + lp:])
        xq_ref[...] = hq

        # ---- key (momentum) encoder: shares the x tile, slim projection head ----
        hk = jnp.maximum(
            jnp.dot(x, w1k[...], preferred_element_type=jnp.float32) + b1k[...], 0.0)
        pk = jnp.dot(hk.astype(jnp.bfloat16), wpk[...],
                     preferred_element_type=jnp.float32) + bpk[...]
        k = pk * jax.lax.rsqrt(
            jnp.maximum(jnp.sum(pk * pk, axis=-1, keepdims=True), 1e-24))

        # ---- l_pos in f32; bf16 embeddings for the streamed contrast / enqueue ----
        lpos_ref[...] = jnp.sum(q * k, axis=-1, keepdims=True) * inv_t
        q_bf = q.astype(jnp.bfloat16)
        qbf_ref[...] = q_bf[:, :low_dim]
        kbf_ref[...] = k[:, :low_dim].astype(jnp.bfloat16)

        if with_proto:
            # logits_proto = q @ prototypes.T / T  (prototypes pre-transposed to
            # (L, C) in the wrapper -> plain NN dot, no per-step transpose)
            lproto_ref[...] = jnp.dot(q_bf, pt[...],
                                      preferred_element_type=jnp.float32) * inv_t
    return kernel


def _make_contrast_kernel(inv_t):
    """l_neg = q @ queue / T, streamed over queue tiles (lane-dense output)."""
    def kernel(q_ref, queue_ref, lneg_ref):
        lneg_ref[...] = jnp.dot(q_ref[...], queue_ref[...],
                                preferred_element_type=jnp.float32) * inv_t
    return kernel


def _enqueue_kernel(ptr_ref, kt_ref, queue_in_ref, queue_out_ref, sem):
    """queue[:, ptr:ptr+B] = keys.T, written in place via an aliased slab DMA."""
    del queue_in_ref  # same HBM buffer as queue_out_ref (input_output_aliases)
    b = kt_ref.shape[1]
    ptr = pl.multiple_of(ptr_ref[0], b)
    cp = pltpu.make_async_copy(kt_ref, queue_out_ref.at[:, pl.ds(ptr, b)], sem)
    cp.start()
    cp.wait()


# ------------------------------ pallas_call wrappers ---------------------------

def encoder_q_forward(x, params):
    """Eval-path query encoder: (output, q, u, x_q) at true (unpadded) widths."""
    d = params['dims']
    n = x.shape[0]
    tm, n_pad = _batch_tile(n)
    xp = _pad2(x, n_pad, d['Dp']).astype(jnp.bfloat16)
    w1 = params['w1'].astype(jnp.bfloat16)
    wh = params['whead'].astype(jnp.bfloat16)
    b1, bh = params['b1'], params['bhead']

    out, q, u, xq = pl.pallas_call(
        _make_encoder_q_kernel(d['Cp'], d['Lp']),
        grid=(n_pad // tm,),
        in_specs=[pl.BlockSpec((tm, d['Dp']), lambda i: (i, 0)),
                  _full(w1), _full(b1), _full(wh), _full(bh)],
        out_specs=(pl.BlockSpec((tm, d['Cp']), lambda i: (i, 0)),
                   pl.BlockSpec((tm, d['Lp']), lambda i: (i, 0)),
                   pl.BlockSpec((tm, d['Up']), lambda i: (i, 0)),
                   pl.BlockSpec((tm, d['Hp']), lambda i: (i, 0))),
        out_shape=(jax.ShapeDtypeStruct((n_pad, d['Cp']), jnp.float32),
                   jax.ShapeDtypeStruct((n_pad, d['Lp']), jnp.float32),
                   jax.ShapeDtypeStruct((n_pad, d['Up']), jnp.float32),
                   jax.ShapeDtypeStruct((n_pad, d['Hp']), jnp.float32)),
        compiler_params=pltpu.CompilerParams(
            dimension_semantics=("parallel",),
            vmem_limit_bytes=_vmem_limit(
                (w1.shape, jnp.bfloat16), (wh.shape, jnp.bfloat16),
                (b1.shape, jnp.float32), (bh.shape, jnp.float32),
                ((tm, d['Dp']), jnp.bfloat16), ((tm, d['Cp']), jnp.float32),
                ((tm, d['Lp']), jnp.float32), ((tm, d['Up']), jnp.float32),
                ((tm, d['Hp']), jnp.float32))),
    )(xp, w1, b1, wh, bh)
    return out[:n, :d['C']], q[:n, :d['L']], u[:n, :1], xq[:n, :d['H']]


def train_q_and_contrast(x, params_q, params_k, queue, prototypes,
                         temperature, is_proto):
    """Fused training encoders (query + momentum key) + streamed MoCo contrast."""
    d = params_q['dims']
    n = x.shape[0]
    tm, n_pad = _batch_tile(n)
    inv_t = float(1.0 / temperature)
    xp = _pad2(x, n_pad, d['Dp']).astype(jnp.bfloat16)

    # one cast per step in the wrapper (weights change every step) — never inside
    # the kernel per grid iteration
    w1q = params_q['w1'].astype(jnp.bfloat16)
    whq = params_q['whead'].astype(jnp.bfloat16)
    w1k = params_k['w1'].astype(jnp.bfloat16)
    wpk = params_k['whead'][:, d['Cp']:d['Cp'] + d['Lp']].astype(jnp.bfloat16)
    bpk = params_k['bhead'][:, d['Cp']:d['Cp'] + d['Lp']]
    b1q, bhq, b1k = params_q['b1'], params_q['bhead'], params_k['b1']

    inputs = [xp, w1q, b1q, whq, bhq, w1k, b1k, wpk, bpk]
    in_specs = [pl.BlockSpec((tm, d['Dp']), lambda i: (i, 0)),
                _full(w1q), _full(b1q), _full(whq), _full(bhq),
                _full(w1k), _full(b1k), _full(wpk), _full(bpk)]
    out_specs = [pl.BlockSpec((tm, d['Cp']), lambda i: (i, 0)),   # output (padded)
                 pl.BlockSpec((tm, d['Up']), lambda i: (i, 0)),   # u (padded)
                 pl.BlockSpec((tm, d['Hp']), lambda i: (i, 0)),   # x_q (padded)
                 pl.BlockSpec((tm, d['L']), lambda i: (i, 0)),    # q bf16
                 pl.BlockSpec((tm, d['L']), lambda i: (i, 0)),    # k bf16
                 pl.BlockSpec((tm, 1), lambda i: (i, 0))]         # l_pos
    out_shape = [jax.ShapeDtypeStruct((n_pad, d['Cp']), jnp.float32),
                 jax.ShapeDtypeStruct((n_pad, d['Up']), jnp.float32),
                 jax.ShapeDtypeStruct((n_pad, d['Hp']), jnp.float32),
                 jax.ShapeDtypeStruct((n_pad, d['L']), jnp.bfloat16),
                 jax.ShapeDtypeStruct((n_pad, d['L']), jnp.bfloat16),
                 jax.ShapeDtypeStruct((n_pad, 1), jnp.float32)]
    if is_proto:
        # prototypes consumed as a zero-padded (Lp, Cp) bf16 transpose
        protot = _pad2(prototypes.T, d['Lp'], d['Cp']).astype(jnp.bfloat16)
        inputs.append(protot)
        in_specs.append(_full(protot))
        out_specs.append(pl.BlockSpec((tm, d['Cp']), lambda i: (i, 0)))
        out_shape.append(jax.ShapeDtypeStruct((n_pad, d['Cp']), jnp.float32))

    vmem = _vmem_limit(
        (w1q.shape, jnp.bfloat16), (whq.shape, jnp.bfloat16),
        (w1k.shape, jnp.bfloat16), (wpk.shape, jnp.bfloat16),
        (b1q.shape, jnp.float32), (bhq.shape, jnp.float32),
        (b1k.shape, jnp.float32), (bpk.shape, jnp.float32),
        ((tm, d['Dp']), jnp.bfloat16), ((tm, d['Cp']), jnp.float32),
        ((tm, d['Hp']), jnp.float32), ((tm, d['Up']), jnp.float32),
        ((tm, d['Cp']), jnp.float32))

    res = pl.pallas_call(
        _make_train_encoder_kernel(d['Cp'], d['Lp'], d['L'], inv_t, is_proto),
        grid=(n_pad // tm,),
        in_specs=in_specs,
        out_specs=tuple(out_specs),
        out_shape=tuple(out_shape),
        compiler_params=pltpu.CompilerParams(
            dimension_semantics=("parallel",), vmem_limit_bytes=vmem),
    )(*inputs)

    if is_proto:
        out, u, xq, q_bf, k_bf, l_pos, lproto = res
        logits_proto = lproto[:n, :d['C']]
    else:
        out, u, xq, q_bf, k_bf, l_pos = res
        logits_proto = 0          # matches the reference when is_proto=False

    # ---- streamed contrast matmul: l_neg = q @ queue / T, queue tiled over K ----
    K = queue.shape[1]
    tk = _queue_tile(K)
    l_neg = pl.pallas_call(
        _make_contrast_kernel(inv_t),
        grid=(n_pad // tm, K // tk),
        in_specs=[pl.BlockSpec((tm, d['L']), lambda i, kk: (i, 0)),
                  pl.BlockSpec((d['L'], tk), lambda i, kk: (0, kk))],
        out_specs=pl.BlockSpec((tm, tk), lambda i, kk: (i, kk)),
        out_shape=jax.ShapeDtypeStruct((n_pad, K), jnp.float32),
        compiler_params=pltpu.CompilerParams(
            dimension_semantics=("parallel", "parallel"),
            vmem_limit_bytes=_vmem_limit(
                ((tm, d['L']), jnp.bfloat16), ((d['L'], tk), jnp.bfloat16),
                ((tm, tk), jnp.float32))),
    )(q_bf, queue)

    # trivial wrapper concat: [l_pos | l_neg] (both already scaled by 1/T)
    logits = jnp.concatenate([l_pos[:n], l_neg[:n]], axis=1)
    return (out[:n, :d['C']], u[:n, :1], xq[:n, :d['H']],
            logits, logits_proto, k_bf[:n])


def dequeue_and_enqueue(queue, queue_ptr, keys_bf16, moco_queue):
    """queue[:, ptr:ptr+B] = keys.T via an aliased in-place slab DMA (no full-queue
    rewrite). For the zero-copy path, jit the surrounding step and donate the queue."""
    b, low = keys_bf16.shape
    kt = keys_bf16.T.astype(queue.dtype)                  # tiny (L, B) transpose
    ptr = jnp.reshape(queue_ptr, (1,)).astype(jnp.int32)
    new_queue = pl.pallas_call(
        _enqueue_kernel,
        grid=(1,),
        in_specs=[pl.BlockSpec(memory_space=pltpu.MemorySpace.SMEM),
                  pl.BlockSpec((low, b), lambda i: (0, 0)),
                  pl.BlockSpec(memory_space=pl.ANY)],
        out_specs=pl.BlockSpec(memory_space=pl.ANY),
        out_shape=jax.ShapeDtypeStruct(queue.shape, queue.dtype),
        scratch_shapes=[pltpu.SemaphoreType.DMA],
        input_output_aliases={2: 0},
    )(ptr, kt, queue)
    new_ptr = (queue_ptr + b) % moco_queue
    return new_queue, new_ptr


# ------------------------------ parameter / state setup -----------------------

def init_encoder_params(key, input_dim, hidden, num_class, low_dim):
    """2-layer MLP encoder in the padded fused-head layout.

    True-dim sub-blocks are random; padding rows/cols are zero so the padded
    matmuls / l2-normalizations give exactly the unpadded results."""
    dp, hp = _round_up(input_dim, LANE), _round_up(hidden, LANE)
    cp, lp, up = _round_up(num_class, LANE), _round_up(low_dim, LANE), LANE
    ks = jax.random.split(key, 4)

    def dense(k, fan_in, fan_out, rows_p, cols_p):
        w = jax.random.normal(k, (fan_in, fan_out), jnp.float32) / jnp.sqrt(
            jnp.float32(fan_in))
        return _pad2(w, rows_p, cols_p)

    w1 = dense(ks[0], input_dim, hidden, dp, hp)
    b1 = jnp.zeros((1, hp), jnp.float32)
    wc = dense(ks[1], hidden, num_class, hp, cp)
    wp = dense(ks[2], hidden, low_dim, hp, lp)
    wu = dense(ks[3], hidden, 1, hp, up)
    whead = jnp.concatenate([wc, wp, wu], axis=1)         # fused [Wc|Wp|Wu]
    bhead = jnp.zeros((1, cp + lp + up), jnp.float32)
    dims = dict(D=input_dim, H=hidden, C=num_class, L=low_dim,
                Dp=dp, Hp=hp, Cp=cp, Lp=lp, Up=up)
    return dict(w1=w1, b1=b1, whead=whead, bhead=bhead, dims=dims)


def init_moco_state(key, config, hidden):
    k_enc, k_queue = jax.random.split(key)
    params_q = init_encoder_params(k_enc, config['input_dim'], hidden,
                                   config['num_class'], config['low_dim'])
    params_k = dict(params_q)                             # param_k.data.copy_(param_q)
    queue = jax.random.normal(
        k_queue, (config['low_dim'], config['moco_queue']), jnp.float32)
    queue = queue / jnp.maximum(
        jnp.linalg.norm(queue, axis=0, keepdims=True), 1e-12)   # F.normalize dim=0
    # queue stored bf16: halves the HBM stream of the dominant contrast operand
    # (the MXU consumes it in bf16 anyway)
    queue = queue.astype(jnp.bfloat16)
    return dict(params_q=params_q, params_k=params_k, queue=queue,
                queue_ptr=jnp.zeros((), jnp.int32),
                prototypes=jnp.zeros((config['num_class'], config['low_dim']),
                                     jnp.float32))


# ------------------------------ MoCo forward (glue + kernels) ------------------

def moco_forward(state, img, target, config, is_eval=False, is_proto=False):
    if is_eval:
        output, q, _, _ = encoder_q_forward(img, state['params_q'])
        return (output, q, target), state

    img_aug = img  # img.clone().cuda() -- JAX arrays are immutable / already on device

    # _momentum_update_key_encoder: elementwise EMA on the f32 master params
    m = config['moco_m']
    params_k = dict(state['params_k'])
    for name in ('w1', 'b1', 'whead', 'bhead'):
        params_k[name] = (state['params_k'][name] * m
                          + state['params_q'][name] * (1.0 - m))

    # fused query+key encoders and streamed contrast (q never leaves the chip as f32)
    output, u, x_q, logits, logits_proto, k = train_q_and_contrast(
        img_aug, state['params_q'], params_k, state['queue'],
        state['prototypes'], config['temperature'], is_proto)
    k = jax.lax.stop_gradient(k)

    # _dequeue_and_enqueue: in-place aliased slab write (not a full-queue copy)
    assert config['moco_queue'] % k.shape[0] == 0
    queue, queue_ptr = dequeue_and_enqueue(state['queue'], state['queue_ptr'],
                                           k, config['moco_queue'])

    # TODO(synk): _select_confident_samples is called but never defined in the
    # reference module, so the confident-sample prototype EMA update is skipped.
    protos = state['prototypes']
    prototypes = protos * jax.lax.rsqrt(
        jnp.maximum(jnp.sum(protos * protos, axis=1, keepdims=True), 1e-24))

    new_state = dict(params_q=state['params_q'], params_k=params_k,
                     queue=queue, queue_ptr=queue_ptr, prototypes=prototypes)
    return (output, target, logits, x_q, logits_proto, u), new_state


# ------------------------------ main -------------------------------------------

if __name__ == "__main__":
    config = dict(input_dim=32, num_class=10, low_dim=16, moco_queue=64,
                  moco_m=0.999, temperature=0.07)
    hidden = 32
    N = 8

    key = jax.random.PRNGKey(0)
    k_state, k_img, k_tgt = jax.random.split(key, 3)
    state = init_moco_state(k_state, config, hidden)

    img = jax.random.normal(k_img, (N, config['input_dim']), jnp.float32)
    target = jax.random.randint(k_tgt, (N,), 0, config['num_class'])

    # training-mode forward (fused encoders + streamed contrast + aliased enqueue)
    (output, tgt, logits, x_q, logits_proto, u), new_state = moco_forward(
        state, img, target, config, is_eval=False, is_proto=True)
    jax.block_until_ready((output, tgt, logits, x_q, logits_proto, u,
                           new_state['queue'], new_state['queue_ptr'],
                           new_state['prototypes']))

    assert output.shape == (N, config['num_class'])
    assert logits.shape == (N, 1 + config['moco_queue'])
    assert logits_proto.shape == (N, config['num_class'])
    assert x_q.shape == (N, hidden)
    assert u.shape == (N, 1)
    assert new_state['queue'].shape == (config['low_dim'], config['moco_queue'])
    assert int(new_state['queue_ptr']) == N % config['moco_queue']

    # training-mode forward without prototype logits (proto matmul/output skipped)
    (out2, _, logits2, _, lp2, _), _ = moco_forward(
        state, img, target, config, is_eval=False, is_proto=False)
    jax.block_until_ready((out2, logits2))
    assert lp2 == 0
    assert logits2.shape == (N, 1 + config['moco_queue'])

    # eval-mode forward (query encoder only)
    (out_e, q_e, tgt_e), _ = moco_forward(state, img, target, config, is_eval=True)
    jax.block_until_ready((out_e, q_e, tgt_e))
    assert out_e.shape == (N, config['num_class'])
    assert q_e.shape == (N, config['low_dim'])

    print("KERNEL_OK")
</pallas_src>

<mosaic_0001>
module attributes {stable_mosaic.version = 11 : i64} {
  func.func @kernel(%arg0: i32, %arg1: memref<8x128xbf16, #tpu.memory_space<vmem>>, %arg2: memref<128x128xbf16, #tpu.memory_space<vmem>>, %arg3: memref<1x128xf32, #tpu.memory_space<vmem>>, %arg4: memref<128x384xbf16, #tpu.memory_space<vmem>>, %arg5: memref<1x384xf32, #tpu.memory_space<vmem>>, %arg6: memref<128x128xbf16, #tpu.memory_space<vmem>>, %arg7: memref<1x128xf32, #tpu.memory_space<vmem>>, %arg8: memref<128x128xbf16, #tpu.memory_space<vmem>>, %arg9: memref<1x128xf32, #tpu.memory_space<vmem>>, %arg10: memref<128x128xbf16, #tpu.memory_space<vmem>>, %arg11: memref<8x128xf32, #tpu.memory_space<vmem>>, %arg12: memref<8x128xf32, #tpu.memory_space<vmem>>, %arg13: memref<8x128xf32, #tpu.memory_space<vmem>>, %arg14: memref<8x16xbf16, #tpu.memory_space<vmem>>, %arg15: memref<8x16xbf16, #tpu.memory_space<vmem>>, %arg16: memref<8x1xf32, #tpu.memory_space<vmem>>, %arg17: memref<8x128xf32, #tpu.memory_space<vmem>>) attributes {dimension_semantics = [#tpu.dimension_semantics<parallel>], iteration_bounds = array<i64: 1>, scalar_prefetch = 0 : i64, scratch_operands = 0 : i64, tpu.core_type = #tpu.core_type<tc>, window_params = [{transform_indices = @transform_0, window_bounds = array<i64: 8, 128>}, {pipeline_mode = #tpu.pipeline_mode<synchronous>, transform_indices = @transform_1, window_bounds = array<i64: 128, 128>}, {pipeline_mode = #tpu.pipeline_mode<synchronous>, transform_indices = @transform_2, window_bounds = array<i64: 1, 128>}, {pipeline_mode = #tpu.pipeline_mode<synchronous>, transform_indices = @transform_3, window_bounds = array<i64: 128, 384>}, {pipeline_mode = #tpu.pipeline_mode<synchronous>, transform_indices = @transform_4, window_bounds = array<i64: 1, 384>}, {pipeline_mode = #tpu.pipeline_mode<synchronous>, transform_indices = @transform_5, window_bounds = array<i64: 128, 128>}, {pipeline_mode = #tpu.pipeline_mode<synchronous>, transform_indices = @transform_6, window_bounds = array<i64: 1, 128>}, {pipeline_mode = #tpu.pipeline_mode<synchronous>, transform_indices = @transform_7, window_bounds = array<i64: 128, 128>}, {pipeline_mode = #tpu.pipeline_mode<synchronous>, transform_indices = @transform_8, window_bounds = array<i64: 1, 128>}, {pipeline_mode = #tpu.pipeline_mode<synchronous>, transform_indices = @transform_9, window_bounds = array<i64: 128, 128>}, {transform_indices = @transform_10, window_bounds = array<i64: 8, 128>}, {transform_indices = @transform_11, window_bounds = array<i64: 8, 128>}, {transform_indices = @transform_12, window_bounds = array<i64: 8, 128>}, {transform_indices = @transform_13, window_bounds = array<i64: 8, 16>}, {transform_indices = @transform_14, window_bounds = array<i64: 8, 16>}, {transform_indices = @transform_15, window_bounds = array<i64: 8, 1>}, {transform_indices = @transform_16, window_bounds = array<i64: 8, 128>}]} {
    %c0 = arith.constant 0 : index
    %c0_0 = arith.constant 0 : index
    %0 = vector.load %arg1[%c0, %c0_0] : memref<8x128xbf16, #tpu.memory_space<vmem>>, vector<8x128xbf16>
    %c0_1 = arith.constant 0 : index
    %c0_2 = arith.constant 0 : index
    %1 = vector.load %arg2[%c0_1, %c0_2] : memref<128x128xbf16, #tpu.memory_space<vmem>>, vector<128x128xbf16>
    %cst = arith.constant dense<0.000000e+00> : vector<8x128xf32>
    %2 = tpu.matmul %0, %1, %cst {dimension_numbers = #tpu.dot_dimension_numbers<[1], [0], [0], [1], [0, 0, 1, 1], [], []>} : vector<8x128xbf16>, vector<128x128xbf16>, vector<8x128xf32> -> vector<8x128xf32>
    %c0_3 = arith.constant 0 : index
    %c0_4 = arith.constant 0 : index
    %3 = vector.load %arg3[%c0_3, %c0_4] : memref<1x128xf32, #tpu.memory_space<vmem>>, vector<1x128xf32>
    %4 = vector.broadcast %3 : vector<1x128xf32> to vector<8x128xf32>
    %5 = arith.addf %2, %4 : vector<8x128xf32>
    %cst_5 = arith.constant 0.000000e+00 : f32
    %6 = vector.broadcast %cst_5 : f32 to vector<8x128xf32>
    %7 = arith.maximumf %5, %6 : vector<8x128xf32>
    %8 = arith.truncf %7 : vector<8x128xf32> to vector<8x128xbf16>
    %c0_6 = arith.constant 0 : index
    %c0_7 = arith.constant 0 : index
    %9 = vector.load %arg4[%c0_6, %c0_7] : memref<128x384xbf16, #tpu.memory_space<vmem>>, vector<128x384xbf16>
    %cst_8 = arith.constant dense<0.000000e+00> : vector<8x384xf32>
    %10 = tpu.matmul %8, %9, %cst_8 {dimension_numbers = #tpu.dot_dimension_numbers<[1], [0], [0], [1], [0, 0, 1, 1], [], []>} : vector<8x128xbf16>, vector<128x384xbf16>, vector<8x384xf32> -> vector<8x384xf32>
    %c0_9 = arith.constant 0 : index
    %c0_10 = arith.constant 0 : index
    %11 = vector.load %arg5[%c0_9, %c0_10] : memref<1x384xf32, #tpu.memory_space<vmem>>, vector<1x384xf32>
    %12 = vector.broadcast %11 : vector<1x384xf32> to vector<8x384xf32>
    %13 = arith.addf %10, %12 : vector<8x384xf32>
    %14 = vector.extract_strided_slice %13 {offsets = [0, 0], sizes = [8, 128], strides = [1, 1]} : vector<8x384xf32> to vector<8x128xf32>
    %c0_11 = arith.constant 0 : index
    %c0_12 = arith.constant 0 : index
    %15 = vector.load %arg11[%c0_11, %c0_12] : memref<8x128xf32, #tpu.memory_space<vmem>>, vector<8x128xf32>
    tpu.vector_store %arg11[%c0_11, %c0_12], %14 {strides = array<i32>} : memref<8x128xf32, #tpu.memory_space<vmem>>, vector<8x128xf32>,
    %16 = vector.extract_strided_slice %13 {offsets = [0, 128], sizes = [8, 128], strides = [1, 1]} : vector<8x384xf32> to vector<8x128xf32>
    %17 = arith.mulf %16, %16 : vector<8x128xf32>
    %cst_13 = arith.constant dense<0.000000e+00> : vector<8xf32>
    %18 = vector.multi_reduction <add>, %17, %cst_13 [1] : vector<8x128xf32> to vector<8xf32>
    %19 = vector.shape_cast %18 : vector<8xf32> to vector<8x1xf32>
    %cst_14 = arith.constant 1.000000e-24 : f32
    %20 = vector.broadcast %cst_14 : f32 to vector<8x1xf32>
    %21 = arith.maximumf %19, %20 : vector<8x1xf32>
    %22 = math.rsqrt %21 : vector<8x1xf32>
    %23 = vector.broadcast %22 : vector<8x1xf32> to vector<8x128xf32>
    %24 = arith.mulf %16, %23 : vector<8x128xf32>
    %25 = vector.extract_strided_slice %13 {offsets = [0, 256], sizes = [8, 128], strides = [1, 1]} : vector<8x384xf32> to vector<8x128xf32>
    %26 = arith.negf %25 : vector<8x128xf32>
    %27 = math.exp %26 : vector<8x128xf32>
    %cst_15 = arith.constant 1.000000e+00 : f32
    %28 = vector.broadcast %cst_15 : f32 to vector<8x128xf32>
    %29 = arith.addf %28, %27 : vector<8x128xf32>
    %30 = arith.divf %28, %29 : vector<8x128xf32>
    %c0_16 = arith.constant 0 : index
    %c0_17 = arith.constant 0 : index
    %31 = vector.load %arg12[%c0_16, %c0_17] : memref<8x128xf32, #tpu.memory_space<vmem>>, vector<8x128xf32>
    tpu.vector_store %arg12[%c0_16, %c0_17], %30 {strides = array<i32>} : memref<8x128xf32, #tpu.memory_space<vmem>>, vector<8x128xf32>,
    %c0_18 = arith.constant 0 : index
    %c0_19 = arith.constant 0 : index
    %32 = vector.load %arg13[%c0_18, %c0_19] : memref<8x128xf32, #tpu.memory_space<vmem>>, vector<8x128xf32>
    tpu.vector_store %arg13[%c0_18, %c0_19], %7 {strides = array<i32>} : memref<8x128xf32, #tpu.memory_space<vmem>>, vector<8x128xf32>,
    %c0_20 = arith.constant 0 : index
    %c0_21 = arith.constant 0 : index
    %33 = vector.load %arg6[%c0_20, %c0_21] : memref<128x128xbf16, #tpu.memory_space<vmem>>, vector<128x128xbf16>
    %cst_22 = arith.constant dense<0.000000e+00> : vector<8x128xf32>
    %34 = tpu.matmul %0, %33, %cst_22 {dimension_numbers = #tpu.dot_dimension_numbers<[1], [0], [0], [1], [0, 0, 1, 1], [], []>} : vector<8x128xbf16>, vector<128x128xbf16>, vector<8x128xf32> -> vector<8x128xf32>
    %c0_23 = arith.constant 0 : index
    %c0_24 = arith.constant 0 : index
    %35 = vector.load %arg7[%c0_23, %c0_24] : memref<1x128xf32, #tpu.memory_space<vmem>>, vector<1x128xf32>
    %36 = vector.broadcast %35 : vector<1x128xf32> to vector<8x128xf32>
    %37 = arith.addf %34, %36 : vector<8x128xf32>
    %cst_25 = arith.constant 0.000000e+00 : f32
    %38 = vector.broadcast %cst_25 : f32 to vector<8x128xf32>
    %39 = arith.maximumf %37, %38 : vector<8x128xf32>
    %40 = arith.truncf %39 : vector<8x128xf32> to vector<8x128xbf16>
    %c0_26 = arith.constant 0 : index
    %c0_27 = arith.constant 0 : index
    %41 = vector.load %arg8[%c0_26, %c0_27] : memref<128x128xbf16, #tpu.memory_space<vmem>>, vector<128x128xbf16>
    %cst_28 = arith.constant dense<0.000000e+00> : vector<8x128xf32>
    %42 = tpu.matmul %40, %41, %cst_28 {dimension_numbers = #tpu.dot_dimension_numbers<[1], [0], [0], [1], [0, 0, 1, 1], [], []>} : vector<8x128xbf16>, vector<128x128xbf16>, vector<8x128xf32> -> vector<8x128xf32>
    %c0_29 = arith.constant 0 : index
    %c0_30 = arith.constant 0 : index
    %43 = vector.load %arg9[%c0_29, %c0_30] : memref<1x128xf32, #tpu.memory_space<vmem>>, vector<1x128xf32>
    %44 = vector.broadcast %43 : vector<1x128xf32> to vector<8x128xf32>
    %45 = arith.addf %42, %44 : vector<8x128xf32>
    %46 = arith.mulf %45, %45 : vector<8x128xf32>
    %cst_31 = arith.constant dense<0.000000e+00> : vector<8xf32>
    %47 = vector.multi_reduction <add>, %46, %cst_31 [1] : vector<8x128xf32> to vector<8xf32>
    %48 = vector.shape_cast %47 : vector<8xf32> to vector<8x1xf32>
    %cst_32 = arith.constant 1.000000e-24 : f32
    %49 = vector.broadcast %cst_32 : f32 to vector<8x1xf32>
    %50 = arith.maximumf %48, %49 : vector<8x1xf32>
    %51 = math.rsqrt %50 : vector<8x1xf32>
    %52 = vector.broadcast %51 : vector<8x1xf32> to vector<8x128xf32>
    %53 = arith.mulf %45, %52 : vector<8x128xf32>
    %54 = arith.mulf %24, %53 : vector<8x128xf32>
    %cst_33 = arith.constant dense<0.000000e+00> : vector<8xf32>
    %55 = vector.multi_reduction <add>, %54, %cst_33 [1] : vector<8x128xf32> to vector<8xf32>
    %56 = vector.shape_cast %55 : vector<8xf32> to vector<8x1xf32>
    %cst_34 = arith.constant 14.2857141 : f32
    %57 = vector.broadcast %cst_34 : f32 to vector<8x1xf32>
    %58 = arith.mulf %56, %57 : vector<8x1xf32>
    %c0_35 = arith.constant 0 : index
    %c0_36 = arith.constant 0 : index
    %59 = vector.load %arg16[%c0_35, %c0_36] : memref<8x1xf32, #tpu.memory_space<vmem>>, vector<8x1xf32>
    tpu.vector_store %arg16[%c0_35, %c0_36], %58 {strides = array<i32>} : memref<8x1xf32, #tpu.memory_space<vmem>>, vector<8x1xf32>,
    %60 = arith.truncf %24 : vector<8x128xf32> to vector<8x128xbf16>
    %61 = vector.extract_strided_slice %60 {offsets = [0, 0], sizes = [8, 16], strides = [1, 1]} : vector<8x128xbf16> to vector<8x16xbf16>
    %c0_37 = arith.constant 0 : index
    %c0_38 = arith.constant 0 : index
    %62 = vector.load %arg14[%c0_37, %c0_38] : memref<8x16xbf16, #tpu.memory_space<vmem>>, vector<8x16xbf16>
    tpu.vector_store %arg14[%c0_37, %c0_38], %61 {strides = array<i32>} : memref<8x16xbf16, #tpu.memory_space<vmem>>, vector<8x16xbf16>,
    %63 = vector.extract_strided_slice %53 {offsets = [0, 0], sizes = [8, 16], strides = [1, 1]} : vector<8x128xf32> to vector<8x16xf32>
    %64 = arith.truncf %63 : vector<8x16xf32> to vector<8x16xbf16>
    %c0_39 = arith.constant 0 : index
    %c0_40 = arith.constant 0 : index
    %65 = vector.load %arg15[%c0_39, %c0_40] : memref<8x16xbf16, #tpu.memory_space<vmem>>, vector<8x16xbf16>
    tpu.vector_store %arg15[%c0_39, %c0_40], %64 {strides = array<i32>} : memref<8x16xbf16, #tpu.memory_space<vmem>>, vector<8x16xbf16>,
    %c0_41 = arith.constant 0 : index
    %c0_42 = arith.constant 0 : index
    %66 = vector.load %arg10[%c0_41, %c0_42] : memref<128x128xbf16, #tpu.memory_space<vmem>>, vector<128x128xbf16>
    %cst_43 = arith.constant dense<0.000000e+00> : vector<8x128xf32>
    %67 = tpu.matmul %60, %66, %cst_43 {dimension_numbers = #tpu.dot_dimension_numbers<[1], [0], [0], [1], [0, 0, 1, 1], [], []>} : vector<8x128xbf16>, vector<128x128xbf16>, vector<8x128xf32> -> vector<8x128xf32>
    %cst_44 = arith.constant 14.2857141 : f32
    %68 = vector.broadcast %cst_44 : f32 to vector<8x128xf32>
    %69 = arith.mulf %67, %68 : vector<8x128xf32>
    %c0_45 = arith.constant 0 : index
    %c0_46 = arith.constant 0 : index
    %70 = vector.load %arg17[%c0_45, %c0_46] : memref<8x128xf32, #tpu.memory_space<vmem>>, vector<8x128xf32>
    tpu.vector_store %arg17[%c0_45, %c0_46], %69 {strides = array<i32>} : memref<8x128xf32, #tpu.memory_space<vmem>>, vector<8x128xf32>,
    return
  }
  func.func @transform_0(%arg0: i32) -> (i32, i32) {
    %c0_i32 = arith.constant 0 : i32
    %c0_i32_0 = arith.constant 0 : i32
    return %arg0, %c0_i32 : i32, i32
  }
  func.func @transform_1(%arg0: i32) -> (i32, i32) {
    %c0_i32 = arith.constant 0 : i32
    %c0_i32_0 = arith.constant 0 : i32
    %c0_i32_1 = arith.constant 0 : i32
    return %c0_i32, %c0_i32_0 : i32, i32
  }
  func.func @transform_2(%arg0: i32) -> (i32, i32) {
    %c0_i32 = arith.constant 0 : i32
    %c0_i32_0 = arith.constant 0 : i32
    %c0_i32_1 = arith.constant 0 : i32
    return %c0_i32, %c0_i32_0 : i32, i32
  }
  func.func @transform_3(%arg0: i32) -> (i32, i32) {
    %c0_i32 = arith.constant 0 : i32
    %c0_i32_0 = arith.constant 0 : i32
    %c0_i32_1 = arith.constant 0 : i32
    return %c0_i32, %c0_i32_0 : i32, i32
  }
  func.func @transform_4(%arg0: i32) -> (i32, i32) {
    %c0_i32 = arith.constant 0 : i32
    %c0_i32_0 = arith.constant 0 : i32
    %c0_i32_1 = arith.constant 0 : i32
    return %c0_i32, %c0_i32_0 : i32, i32
  }
  func.func @transform_5(%arg0: i32) -> (i32, i32) {
    %c0_i32 = arith.constant 0 : i32
    %c0_i32_0 = arith.constant 0 : i32
    %c0_i32_1 = arith.constant 0 : i32
    return %c0_i32, %c0_i32_0 : i32, i32
  }
  func.func @transform_6(%arg0: i32) -> (i32, i32) {
    %c0_i32 = arith.constant 0 : i32
    %c0_i32_0 = arith.constant 0 : i32
    %c0_i32_1 = arith.constant 0 : i32
    return %c0_i32, %c0_i32_0 : i32, i32
  }
  func.func @transform_7(%arg0: i32) -> (i32, i32) {
    %c0_i32 = arith.constant 0 : i32
    %c0_i32_0 = arith.constant 0 : i32
    %c0_i32_1 = arith.constant 0 : i32
    return %c0_i32, %c0_i32_0 : i32, i32
  }
  func.func @transform_8(%arg0: i32) -> (i32, i32) {
    %c0_i32 = arith.constant 0 : i32
    %c0_i32_0 = arith.constant 0 : i32
    %c0_i32_1 = arith.constant 0 : i32
    return %c0_i32, %c0_i32_0 : i32, i32
  }
  func.func @transform_9(%arg0: i32) -> (i32, i32) {
    %c0_i32 = arith.constant 0 : i32
    %c0_i32_0 = arith.constant 0 : i32
    %c0_i32_1 = arith.constant 0 : i32
    return %c0_i32, %c0_i32_0 : i32, i32
  }
  func.func @transform_10(%arg0: i32) -> (i32, i32) {
    %c0_i32 = arith.constant 0 : i32
    %c0_i32_0 = arith.constant 0 : i32
    return %arg0, %c0_i32 : i32, i32
  }
  func.func @transform_11(%arg0: i32) -> (i32, i32) {
    %c0_i32 = arith.constant 0 : i32
    %c0_i32_0 = arith.constant 0 : i32
    return %arg0, %c0_i32 : i32, i32
  }
  func.func @transform_12(%arg0: i32) -> (i32, i32) {
    %c0_i32 = arith.constant 0 : i32
    %c0_i32_0 = arith.constant 0 : i32
    return %arg0, %c0_i32 : i32, i32
  }
  func.func @transform_13(%arg0: i32) -> (i32, i32) {
    %c0_i32 = arith.constant 0 : i32
    %c0_i32_0 = arith.constant 0 : i32
    return %arg0, %c0_i32 : i32, i32
  }
  func.func @transform_14(%arg0: i32) -> (i32, i32) {
    %c0_i32 = arith.constant 0 : i32
    %c0_i32_0 = arith.constant 0 : i32
    return %arg0, %c0_i32 : i32, i32
  }
  func.func @transform_15(%arg0: i32) -> (i32, i32) {
    %c0_i32 = arith.constant 0 : i32
    %c0_i32_0 = arith.constant 0 : i32
    return %arg0, %c0_i32 : i32, i32
  }
  func.func @transform_16(%arg0: i32) -> (i32, i32) {
    %c0_i32 = arith.constant 0 : i32
    %c0_i32_0 = arith.constant 0 : i32
    return %arg0, %c0_i32 : i32, i32
  }
}

</mosaic_0001>

<bundles_post_ra>
// kernel: tpu_custom_call.1
= control target key start
LH: loop header
LB: loop body
LE: loop exit
PB: predicated region body
PF: predicated region fallthrough
CT: control target
= control target key end

     0   :  { %s1865_s0 = inlined_call_operand.hbm [shape: bf16[8,128], index: 0, kind: input, shape index: {}]   ;;  %s1866_s1 = inlined_call_operand.hbm [shape: bf16[128,128], index: 1, kind: input, shape index: {}]   ;;  %s1867_s2 = inlined_call_operand.vmem [shape: f32[1,128], index: 2, kind: input, shape index: {}]   ;;  %s1868_s3 = inlined_call_operand.hbm [shape: bf16[128,384], index: 3, kind: input, shape index: {}]   ;;  %s1869_s4 = inlined_call_operand.vmem [shape: f32[1,384], index: 4, kind: input, shape index: {}]   ;;  %s1870_s5 = inlined_call_operand.hbm [shape: bf16[128,128], index: 5, kind: input, shape index: {}]   ;;  %s1871_s6 = inlined_call_operand.vmem [shape: f32[1,128], index: 6, kind: input, shape index: {}]   ;;  %s1872_s7 = inlined_call_operand.hbm [shape: bf16[128,128], index: 7, kind: input, shape index: {}]   ;;  %s1873_s8 = inlined_call_operand.vmem [shape: f32[1,128], index: 8, kind: input, shape index: {}]   ;;  %s1874_s9 = inlined_call_operand.hbm [shape: bf16[128,128], index: 9, kind: input, shape index: {}]   ;;  %s1875_s10 = inlined_call_operand.hbm [shape: f32[8,128], index: 10, kind: output, shape index: {0}]   ;;  %s1876_s11 = inlined_call_operand.hbm [shape: f32[8,128], index: 11, kind: output, shape index: {1}]   ;;  %s1877_s12 = inlined_call_operand.hbm [shape: f32[8,128], index: 12, kind: output, shape index: {2}]   ;;  %s1878_s13 = inlined_call_operand.hbm [shape: bf16[8,16], index: 13, kind: output, shape index: {3}]   ;;  %s1879_s14 = inlined_call_operand.hbm [shape: bf16[8,16], index: 14, kind: output, shape index: {4}]   ;;  %s1880_s15 = inlined_call_operand.vmem [shape: f32[8,1], index: 15, kind: output, shape index: {5}]   ;;  %s1881_s16 = inlined_call_operand.hbm [shape: f32[8,128], index: 16, kind: output, shape index: {6}]  }
   0x1   :  { %1883 = sst [smem:[#allocation30_spill]] %s1865_s0 }
   0x2   :  { %1884 = sst [smem:[#allocation31_spill]] %s1880_s15 }
   0x3   :  { %22 = vsyncpa [#allocation3], 0 }
   0x4   :  { %23 = vsyncpa [#allocation6], 0 }
   0x5   :  { %24 = vsyncpa [#allocation9], 0 }
   0x6   :  { %25 = vsyncpa [#allocation12], 0 }
   0x7   :  { %26 = vsyncpa [#allocation4], 0 }
   0x8   :  { %27 = vsyncpa [#allocation15], 0 }
   0x9   :  { %28 = vsyncpa [#allocation18], 0 }
   0xa   :  { %29 = vsyncpa [#allocation21], 0  ;;  %s1527_s21 = smov [#allocation5]   ;;  %s1247_s25 = scalar_lea.hbm %s1866_s1, 1024 }
   0xb   :  { %s45_s22 = sshll.u32 %s1527_s21, 4  ;;  %p1248_p0 = scmp.ne.s32.totalorder %s1866_s1, %s1247_s25  ;;  %s46_s22 = int_to_ptr.vmem [resolvable:$true] %s45_s22 }
   0xc   :  { %p1251_p1 = scmp.lt.u32.totalorder %s1247_s25, %s1866_s1 }
   0xe   :  { %p1253_p2 = pnand %p1251_p1, %p1248_p0 }
  0x10   :  { %1256 = shalt.err (!%p1253_p2)
}
  0x11   :  { %s1257_s30 = scalar_lea.vmem %s46_s22, 1024  ;;  %p1262_p4 = scmp.lt.s32.totalorder %s46_s22, %s46_s22 }
  0x12   :  { %p1258_p3 = scmp.ne.s32.totalorder %s46_s22, %s1257_s30  ;;  %p1263_p5 = scmp.lt.s32.totalorder %s1257_s30, %s1257_s30 }
  0x14   :  { %p1264_p6 = por %p1263_p5, %p1262_p4 }
  0x16   :  { %p1265_p7 = pnand %p1264_p6, %p1258_p3 }
  0x18   :  { %1268 = shalt.err (!%p1265_p7)
}
  0x19   :  { %s1528_s0 = smov 64   ;;  %s1529_s17 = smov 4  }
  0x1a   :  { %51 = dma.hbm_to_vmem [thread:$0]  %s1866_s1, 1024, %s46_s22, [#allocation6], %s1528_s0, %s1528_s0, %s1529_s17  }
  0x1b   :  { %s1530_s20 = smov [#allocation8]   ;;  %s1531_s23 = smov [#allocation2]  }
  0x1c   :  { %s73_s21 = sshll.u32 %s1530_s20, 4  ;;  %s36_s24 = sshll.u32 %s1531_s23, 4  ;;  %s74_s21 = int_to_ptr.vmem [resolvable:$true] %s73_s21  ;;  %s37_s24 = int_to_ptr.vmem [resolvable:$true] %s36_s24 }
  0x1d   :  { %s1269_s27 = scalar_lea.hbm %s1870_s5, 1024 }
  0x1e   :  { %p1270_p8 = scmp.ne.s32.totalorder %s1870_s5, %s1269_s27  ;;  %p1273_p9 = scmp.lt.u32.totalorder %s1269_s27, %s1870_s5 }
  0x20   :  { %p1275_p10 = pnand %p1273_p9, %p1270_p8 }
  0x22   :  { %1278 = shalt.err (!%p1275_p10)
}
  0x23   :  { %s1279_s1 = scalar_lea.vmem %s74_s21, 1024  ;;  %p1284_p12 = scmp.lt.s32.totalorder %s74_s21, %s74_s21 }
  0x24   :  { %p1280_p11 = scmp.ne.s32.totalorder %s74_s21, %s1279_s1  ;;  %p1285_p13 = scmp.lt.s32.totalorder %s1279_s1, %s1279_s1 }
  0x26   :  { %p1286_p0 = por %p1285_p13, %p1284_p12 }
  0x28   :  { %p1287_p1 = pnand %p1286_p0, %p1280_p11 }
  0x2a   :  { %1290 = shalt.err (!%p1287_p1)
}
  0x2b   :  { %79 = dma.hbm_to_vmem [thread:$0]  %s1870_s5, 1024, %s74_s21, [#allocation9], %s1528_s0, %s1528_s0, %s1529_s17  }
  0x2c   :  { %s1885_s20 = sld [smem:[#allocation30_spill]] }
  0x32   :  { %s1291_s23 = scalar_lea.hbm %s1885_s20, 64 }
  0x33   :  { %p1292_p2 = scmp.ne.s32.totalorder %s1885_s20, %s1291_s23  ;;  %p1295_p3 = scmp.lt.u32.totalorder %s1291_s23, %s1885_s20 }
  0x35   :  { %p1297_p4 = pnand %p1295_p3, %p1292_p2 }
  0x37   :  { %1300 = shalt.err (!%p1297_p4)
}
  0x38   :  { %s1301_s29 = scalar_lea.vmem %s37_s24, 64  ;;  %p1306_p6 = scmp.lt.s32.totalorder %s37_s24, %s37_s24 }
  0x39   :  { %p1302_p5 = scmp.ne.s32.totalorder %s37_s24, %s1301_s29  ;;  %p1307_p7 = scmp.lt.s32.totalorder %s1301_s29, %s1301_s29 }
  0x3b   :  { %p1308_p8 = por %p1307_p7, %p1306_p6 }
  0x3d   :  { %p1309_p9 = pnand %p1308_p8, %p1302_p5 }
  0x3f   :  { %1312 = shalt.err (!%p1309_p9)
}
  0x40   :  { %39 = dma.hbm_to_vmem [thread:$0]  %s1885_s20, 64, %s37_s24, [#allocation3]  }
  0x41   :  { %s1532_s30 = smov [#allocation7]   ;;  %s1313_s19 = scalar_lea.hbm %s1868_s3, 3072 }
  0x42   :  { %s59_s1 = sshll.u32 %s1532_s30, 4  ;;  %p1314_p10 = scmp.ne.s32.totalorder %s1868_s3, %s1313_s19  ;;  %s60_s1 = int_to_ptr.vmem [resolvable:$true] %s59_s1 }
  0x43   :  { %p1317_p11 = scmp.lt.u32.totalorder %s1313_s19, %s1868_s3 }
  0x45   :  { %p1319_p12 = pnand %p1317_p11, %p1314_p10 }
  0x47   :  { %1322 = shalt.err (!%p1319_p12)
}
  0x48   :  { %s1323_s27 = scalar_lea.vmem %s60_s1, 3072  ;;  %p1328_p0 = scmp.lt.s32.totalorder %s60_s1, %s60_s1 }
  0x49   :  { %p1324_p13 = scmp.ne.s32.totalorder %s60_s1, %s1323_s27  ;;  %p1329_p1 = scmp.lt.s32.totalorder %s1323_s27, %s1323_s27 }
  0x4b   :  { %p1330_p2 = por %p1329_p1, %p1328_p0 }
  0x4d   :  { %p1331_p3 = pnand %p1330_p2, %p1324_p13 }
  0x4f   :  { %1334 = shalt.err (!%p1331_p3)
}
  0x50   :  { %s1533_s24 = smov 192   ;;  %s1534_s20 = smov 12  }
  0x51   :  { %65 = dma.hbm_to_vmem [thread:$0]  %s1868_s3, 3072, %s60_s1, [#allocation6], %s1533_s24, %s1533_s24, %s1534_s20  }
  0x52   :  { %s1535_s5 = smov [#allocation10]   ;;  %s1536_s30 = smov [#allocation11]  }
  0x53   :  { %s87_s21 = sshll.u32 %s1535_s5, 4  ;;  %s101_s22 = sshll.u32 %s1536_s30, 4  ;;  %s88_s21 = int_to_ptr.vmem [resolvable:$true] %s87_s21  ;;  %s1685_s22 = int_to_ptr.vmem [resolvable:$true] %s101_s22 }
  0x54   :  { %s1335_s15 = scalar_lea.hbm %s1872_s7, 1024 }
  0x55   :  { %p1336_p4 = scmp.ne.s32.totalorder %s1872_s7, %s1335_s15  ;;  %p1339_p5 = scmp.lt.u32.totalorder %s1335_s15, %s1872_s7 }
  0x57   :  { %p1341_p6 = pnand %p1339_p5, %p1336_p4 }
  0x59   :  { %1344 = shalt.err (!%p1341_p6)
}
  0x5a   :  { %s1345_s3 = scalar_lea.vmem %s88_s21, 1024  ;;  %p1350_p8 = scmp.lt.s32.totalorder %s88_s21, %s88_s21 }
  0x5b   :  { %p1346_p7 = scmp.ne.s32.totalorder %s88_s21, %s1345_s3  ;;  %p1351_p9 = scmp.lt.s32.totalorder %s1345_s3, %s1345_s3 }
  0x5d   :  { %p1352_p10 = por %p1351_p9, %p1350_p8 }
  0x5f   :  { %p1353_p11 = pnand %p1352_p10, %p1346_p7 }
  0x61   :  { %1356 = shalt.err (!%p1353_p11)
}
  0x62   :  { %93 = dma.hbm_to_vmem [thread:$0]  %s1872_s7, 1024, %s88_s21, [#allocation9], %s1528_s0, %s1528_s0, %s1529_s17  }
  0x63   :  { %s1357_s29 = scalar_lea.hbm %s1874_s9, 1024 }
  0x64   :  { %p1358_p12 = scmp.ne.s32.totalorder %s1874_s9, %s1357_s29  ;;  %p1361_p13 = scmp.lt.u32.totalorder %s1357_s29, %s1874_s9 }
  0x66   :  { %p1363_p0 = pnand %p1361_p13, %p1358_p12 }
  0x68   :  { %1366 = shalt.err (!%p1363_p0)
}
  0x69   :  { %s1367_s15 = scalar_lea.vmem %s1685_s22, 1024  ;;  %p1372_p2 = scmp.lt.s32.totalorder %s1685_s22, %s1685_s22 }
  0x6a   :  { %p1368_p1 = scmp.ne.s32.totalorder %s1685_s22, %s1367_s15  ;;  %p1373_p3 = scmp.lt.s32.totalorder %s1367_s15, %s1367_s15 }
  0x6c   :  { %p1374_p4 = por %p1373_p3, %p1372_p2 }
  0x6e   :  { %p1375_p5 = pnand %p1374_p4, %p1368_p1 }
  0x70   :  { %1378 = shalt.err (!%p1375_p5)
}
  0x71   :  { %107 = dma.hbm_to_vmem [thread:$0]  %s1874_s9, 1024, %s1685_s22, [#allocation12], %s1528_s0, %s1528_s0, %s1529_s17  }
  0x72   :  { %1511 = dma.done.wait [#allocation3], 64  }
  0x73   :  { %1512 = vsyncadd [#allocation3], 4294967232 }
  0x74   :  { %1513 = dma.done.wait [#allocation6], 4096  }
  0x75   :  { %1514 = vsyncadd [#allocation6], 4294963200 }
  0x76   :  { %1515 = dma.done.wait [#allocation9], 2048  }
  0x77   :  { %1516 = vsyncadd [#allocation9], 4294965248 }
  0x78   :  { %1517 = dma.done.wait [#allocation12], 1024  }
  0x79   :  { %1518 = vsyncadd [#allocation12], 4294966272  ;;  %v1537_v0 = vmov 0.0   ;;  %vm1538_vm0 = vmmov 0   ;;  %v1175_v1 = vld [vmem:[#allocation5] sm:$0xff]   ;;  %v1176_v2 = vld [vmem:[#allocation5 + $0x8] sm:$0xff]   ;;  %v275_v63 = vlaneseq }
  0x7a   :  { %1056 = vmatprep.subr.bf16.mxu0 %v1537_v0  ;;  %1072 = vmatprep.mubr.msk.bf16.mxu0 %vm1538_vm0, %v1537_v0  ;;  %v1177_v3 = vld [vmem:[#allocation5 + $0x10] sm:$0xff]   ;;  %v1185_v5 = vld [vmem:[#allocation7] ss:$12 sps:$4 sm:$0xff]   ;;  %v1178_v6 = vld [vmem:[#allocation5 + $0x18] sm:$0xff]   ;;  %v1539_v34 = vmov 0   ;;  %vm751_vm1 = vcmask 125952  }
  0x7b   :  { %1057 = vmatpush3.bf16.msra.mxu0 %v1175_v1  ;;  %v1183_v4 = vld [vmem:[#allocation7 + $0x4] ss:$12 sps:$4 sm:$0xff]   ;;  %v1187_v7 = vld [vmem:[#allocation7 + $0x1c] ss:$12 sps:$4 sm:$0xff]   ;;  %v1191_v9 = vld [vmem:[#allocation7 + $0x34] ss:$12 sps:$4 sm:$0xff]   ;;  %450 = vmatprep.mubr.bf16.mxu1 %v1539_v34 }
  0x7c   :  { %1058 = vmatprep.subr.bf16.mxu0 %v1537_v0  ;;  %418 = vmatprep.subr.bf16.mxu1 %v1183_v4  ;;  %v1189_v8 = vld [vmem:[#allocation7 + $0x18] ss:$12 sps:$4 sm:$0xff]   ;;  %v1193_v11 = vld [vmem:[#allocation7 + $0x30] ss:$12 sps:$4 sm:$0xff]   ;;  %v1180_v13 = vld [vmem:[#allocation5 + $0x28] sm:$0xff]   ;;  %v276_v1 = vshrl.u32 %v275_v63, 7 }
  0x7d   :  { %419 = vmatpush1.bf16.msra.mxu1 %v1185_v5  ;;  %v1179_v10 = vld [vmem:[#allocation5 + $0x20] sm:$0xff]   ;;  %v1195_v12 = vld [vmem:[#allocation7 + $0x4c] ss:$12 sps:$4 sm:$0xff]   ;;  %v1197_v14 = vld [vmem:[#allocation7 + $0x48] ss:$12 sps:$4 sm:$0xff]   ;;  %s1541_s26 = smov [#allocation17]  }
  0x7e   :  { %420 = vmatprep.subr.bf16.mxu1 %v1187_v7  ;;  %v1199_v15 = vld [vmem:[#allocation7 + $0x64] ss:$12 sps:$4 sm:$0xff]   ;;  %v1201_v17 = vld [vmem:[#allocation7 + $0x60] ss:$12 sps:$4 sm:$0xff]   ;;  %v1203_v18 = vld [vmem:[#allocation7 + $0x7c] ss:$12 sps:$4 sm:$0xff]  }
  0x7f   :  { %1059 = vmatpush3.bf16.msra.mxu0 %v1176_v2  ;;  %v1181_v16 = vld [vmem:[#allocation5 + $0x30] sm:$0xff]   ;;  %v1182_v19 = vld [vmem:[#allocation5 + $0x38] sm:$0xff]   ;;  %v1190_v25 = vld [vmem:[#allocation7 + $0x20] ss:$12 sps:$4 sm:$0xff]   ;;  %v277_v2 = vsub.s32 0, %v276_v1  ;;  %v281_v5 = vsub.s32 1, %v276_v1 }
  0x80   :  { %1060 = vmatprep.subr.bf16.mxu0 %v1537_v0  ;;  %v1205_v20 = vld [vmem:[#allocation7 + $0x78] ss:$12 sps:$4 sm:$0xff]   ;;  %v1207_v21 = vld [vmem:[#allocation7 + $0x94] ss:$12 sps:$4 sm:$0xff]   ;;  %v1732_v22 = vld [vmem:[#allocation2] sm:$0xf] }
  0x81   :  { %421 = vmatpush1.bf16.msra.mxu1 %v1189_v8  ;;  %v1186_v23 = vld [vmem:[#allocation7 + $0x8] ss:$12 sps:$4 sm:$0xff]   ;;  %v1209_v24 = vld [vmem:[#allocation7 + $0x90] ss:$12 sps:$4 sm:$0xff]   ;;  %v1194_v26 = vld [vmem:[#allocation7 + $0x38] ss:$12 sps:$4 sm:$0xff]  }
  0x82   :  { %422 = vmatprep.subr.bf16.mxu1 %v1191_v9  ;;  %v1198_v27 = vld [vmem:[#allocation7 + $0x50] ss:$12 sps:$4 sm:$0xff]   ;;  %v1202_v28 = vld [vmem:[#allocation7 + $0x68] ss:$12 sps:$4 sm:$0xff]   ;;  %v1206_v29 = vld [vmem:[#allocation7 + $0x80] ss:$12 sps:$4 sm:$0xff]  }
  0x83   :  { %1061 = vmatpush3.bf16.msra.mxu0 %v1177_v3  ;;  %v1210_v30 = vld [vmem:[#allocation7 + $0x98] ss:$12 sps:$4 sm:$0xff]   ;;  %v1213_v32 = vld [vmem:[#allocation7 + $0xa8] ss:$12 sps:$4 sm:$0xff]   ;;  %v1214_v33 = vld [vmem:[#allocation7 + $0xb0] ss:$12 sps:$4 sm:$0xff]  }
  0x84   :  { %1062 = vmatprep.subr.bf16.mxu0 %v1537_v0  ;;  %v1211_v31 = vld [vmem:[#allocation7 + $0xac] ss:$12 sps:$4 sm:$0xff]   ;;  %v951_v35 = vld [vmem:[%s1867_s2] ss:$0 sm:$0xff]  ;;  %v1215_v42 = vld [vmem:[#allocation8] sm:$0xff]   ;;  %v285_v3 = vsub.s32 2, %v276_v1 }
  0x85   :  { %423 = vmatpush1.bf16.msra.mxu1 %v1193_v11  ;;  %v1216_v44 = vld [vmem:[#allocation8 + $0x8] sm:$0xff]   ;;  %v1217_v45 = vld [vmem:[#allocation8 + $0x10] sm:$0xff]   ;;  %v1218_v46 = vld [vmem:[#allocation8 + $0x18] sm:$0xff]   ;;  %s897_s27 = sshll.u32 %s1541_s26, 4  ;;  %s898_s27 = int_to_ptr.vmem [resolvable:$true] %s897_s27 }
  0x86   :  { %424 = vmatprep.subr.bf16.mxu1 %v1195_v12  ;;  %v1219_v47 = vld [vmem:[#allocation8 + $0x20] sm:$0xff]   ;;  %v1220_v48 = vld [vmem:[#allocation8 + $0x28] sm:$0xff]   ;;  %v1221_v49 = vld [vmem:[#allocation8 + $0x30] sm:$0xff]  }
  0x87   :  { %1063 = vmatpush3.bf16.msra.mxu0 %v1178_v6  ;;  %v1222_v50 = vld [vmem:[#allocation8 + $0x38] sm:$0xff]   ;;  %v1223_v51 = vld [vmem:[#allocation10] sm:$0xff]   ;;  %v1224_v52 = vld [vmem:[#allocation10 + $0x8] sm:$0xff]  }
  0x88   :  { %1064 = vmatprep.subr.bf16.mxu0 %v1537_v0  ;;  %v1225_v53 = vld [vmem:[#allocation10 + $0x10] sm:$0xff]   ;;  %v1226_v54 = vld [vmem:[#allocation10 + $0x18] sm:$0xff]   ;;  %v1227_v55 = vld [vmem:[#allocation10 + $0x20] sm:$0xff]  }
  0x89   :  { %425 = vmatpush1.bf16.msra.mxu1 %v1197_v14  ;;  %v1228_v56 = vld [vmem:[#allocation10 + $0x28] sm:$0xff]   ;;  %v1229_v57 = vld [vmem:[#allocation10 + $0x30] sm:$0xff]   ;;  %v1230_v58 = vld [vmem:[#allocation10 + $0x38] sm:$0xff]  }
  0x8a   :  { %426 = vmatprep.subr.bf16.mxu1 %v1199_v15  ;;  %v1231_v59 = vld [vmem:[#allocation11] sm:$0xff]   ;;  %v1232_v60 = vld [vmem:[#allocation11 + $0x8] sm:$0xff]   ;;  %v1233_v61 = vld [vmem:[#allocation11 + $0x10] sm:$0xff]  }
  0x8b   :  { %1065 = vmatpush3.bf16.msra.mxu0 %v1179_v10  ;;  %v1234_v62 = vld [vmem:[#allocation11 + $0x18] sm:$0xff]  }
  0x8c   :  { %1066 = vmatprep.subr.bf16.mxu0 %v1537_v0  ;;  %v273_v4 = vld [vmem:[%s1869_s4] sm:$0x7] }
  0x8d   :  { %427 = vmatpush1.bf16.msra.mxu1 %v1201_v17  ;;  %v278_v6 = vrot.slane %v273_v4, %v277_v2  ;;  %v286_v7 = vrot.slane %v273_v4, %v285_v3  ;;  %v282_v8 = vrot.slane %v273_v4, %v281_v5 }
  0x8e   :  { %428 = vmatprep.subr.bf16.mxu1 %v1203_v18 }
  0x8f   :  { %1067 = vmatpush3.bf16.msra.mxu0 %v1180_v13 }
  0x90   :  { %1068 = vmatprep.subr.bf16.mxu0 %v1537_v0 }
  0x91   :  { %429 = vmatpush1.bf16.msra.mxu1 %v1205_v20 }
  0x92   :  { %430 = vmatprep.subr.bf16.mxu1 %v1207_v21 }
  0x93   :  { %1069 = vmatpush3.bf16.msra.mxu0 %v1181_v16 }
  0x94   :  { %1070 = vmatprep.subr.bf16.mxu0 %v1537_v0 }
  0x95   :  { %431 = vmatpush1.bf16.msra.mxu1 %v1209_v24  ;;  %v1235_v24 = vld [vmem:[#allocation11 + $0x20] sm:$0xff]  }
  0x96   :  { %432 = vmatprep.subr.bf16.mxu1 %v1211_v31 }
  0x97   :  { %1071 = vmatpush3.bf16.msra.mxu0 %v1182_v19 }
  0x98   :  { %1076 = vmatprep.subr.bf16.mxu0 %v1537_v0 }
  0x99   :  { %433 = vmatpush1.bf16.msra.mxu1 %v1213_v32 }
  0x9a   :  { %1073 = vmatmul.mubr.bf16.vlgmr.msra.gmra.mrb[0].mxu0 %v1732_v22  ;;  %1096 = vmatprep.subr.bf16.mxu1 %v1537_v0 }
  0x9b   :  { %1077 = vmatpush3.bf16.msra.mxu0 %v1186_v23  ;;  %1092 = vmatprep.mubr.msk.bf16.mxu0 %vm1538_vm0, %v1537_v0 }
  0x9c   :  { %1078 = vmatprep.subr.bf16.mxu0 %v1537_v0 }
  0x9f   :  { %1079 = vmatpush3.bf16.msra.mxu0 %v1190_v25  ;;  %v1236_v25 = vld [vmem:[#allocation11 + $0x28] sm:$0xff]  }
  0xa0   :  { %1080 = vmatprep.subr.bf16.mxu0 %v1537_v0 }
  0xa3   :  { %1081 = vmatpush3.bf16.msra.mxu0 %v1194_v26  ;;  %v1237_v26 = vld [vmem:[#allocation11 + $0x30] sm:$0xff]  }
  0xa4   :  { %1082 = vmatprep.subr.bf16.mxu0 %v1537_v0 }
  0xa7   :  { %1083 = vmatpush3.bf16.msra.mxu0 %v1198_v27 }
  0xa8   :  { %1084 = vmatprep.subr.bf16.mxu0 %v1537_v0 }
  0xab   :  { %1085 = vmatpush3.bf16.msra.mxu0 %v1202_v28  ;;  %v985_v28 = vld [vmem:[%s1871_s6] ss:$0 sm:$0xff] }
  0xac   :  { %1086 = vmatprep.subr.bf16.mxu0 %v1537_v0 }
  0xaf   :  { %1087 = vmatpush3.bf16.msra.mxu0 %v1206_v29  ;;  %v1238_v29 = vld [vmem:[#allocation11 + $0x38] sm:$0xff]  }
  0xb0   :  { %1088 = vmatprep.subr.bf16.mxu0 %v1537_v0 }
  0xb3   :  { %1089 = vmatpush3.bf16.msra.mxu0 %v1210_v30 }
  0xb4   :  { %1090 = vmatprep.subr.bf16.mxu0 %v1537_v0 }
  0xb7   :  { %1091 = vmatpush3.bf16.msra.mxu0 %v1214_v33 }
  0xb8   :  { %1116 = vmatprep.subr.bf16.mxu0 %v1537_v0 }
 0x16d   :  { %v233_v36 = vpop.f32.mrb[0].mxu0 }
 0x16e   :  { %v234_v37 = vadd.f32 %v951_v35, %v233_v36  ;;  %v1074_v38 = vpop.f32.mrb[1].mxu0 }
 0x16f   :  { %v236_v39 = vpop.f32.mrb[2].mxu0 }
 0x170   :  { %v239_v40 = vmax.f32 %v234_v37, 0.0  ;;  %v1075_v41 = vpop.f32.mrb[3].mxu0 }
 0x172   :  { %v240_v43 = vpack.c.bf16 %v239_v40, %v239_v40  ;;  %513 = vst [vmem:[#allocation16] sm:$0xff] %v239_v40 }
 0x174   :  { %451 = vmatmul.mubr.bf16.vlgmr.msra.gmra.mrb[0].mxu1 %v240_v43  ;;  %1093 = vmatmul.mubr.bf16.vlgmr.msra.gmra.mrb[4].mxu0 %v240_v43 }
 0x175   :  { %1097 = vmatpush3.bf16.msra.mxu1 %v1215_v42  ;;  %1112 = vmatprep.mubr.msk.bf16.mxu1 %vm1538_vm0, %v1537_v0 }
 0x176   :  { %1098 = vmatprep.subr.bf16.mxu1 %v1537_v0  ;;  %1132 = vmatprep.mubr.msk.bf16.mxu0 %vm1538_vm0, %v1537_v0 }
 0x177   :  { %1117 = vmatpush3.bf16.msra.mxu0 %v1223_v51 }
 0x178   :  { %1118 = vmatprep.subr.bf16.mxu0 %v1537_v0 }
 0x179   :  { %1099 = vmatpush3.bf16.msra.mxu1 %v1216_v44 }
 0x17a   :  { %1100 = vmatprep.subr.bf16.mxu1 %v1537_v0 }
 0x17b   :  { %1119 = vmatpush3.bf16.msra.mxu0 %v1224_v52 }
 0x17c   :  { %1120 = vmatprep.subr.bf16.mxu0 %v1537_v0 }
 0x17d   :  { %1101 = vmatpush3.bf16.msra.mxu1 %v1217_v45 }
 0x17e   :  { %1102 = vmatprep.subr.bf16.mxu1 %v1537_v0 }
 0x17f   :  { %1121 = vmatpush3.bf16.msra.mxu0 %v1225_v53 }
 0x180   :  { %1122 = vmatprep.subr.bf16.mxu0 %v1537_v0 }
 0x181   :  { %1103 = vmatpush3.bf16.msra.mxu1 %v1218_v46 }
 0x182   :  { %1104 = vmatprep.subr.bf16.mxu1 %v1537_v0 }
 0x183   :  { %1123 = vmatpush3.bf16.msra.mxu0 %v1226_v54 }
 0x184   :  { %1124 = vmatprep.subr.bf16.mxu0 %v1537_v0 }
 0x185   :  { %1105 = vmatpush3.bf16.msra.mxu1 %v1219_v47 }
 0x186   :  { %1106 = vmatprep.subr.bf16.mxu1 %v1537_v0 }
 0x187   :  { %1125 = vmatpush3.bf16.msra.mxu0 %v1227_v55 }
 0x188   :  { %1126 = vmatprep.subr.bf16.mxu0 %v1537_v0 }
 0x189   :  { %1107 = vmatpush3.bf16.msra.mxu1 %v1220_v48 }
 0x18a   :  { %1108 = vmatprep.subr.bf16.mxu1 %v1537_v0 }
 0x18b   :  { %1127 = vmatpush3.bf16.msra.mxu0 %v1228_v56 }
 0x18c   :  { %1128 = vmatprep.subr.bf16.mxu0 %v1537_v0 }
 0x18d   :  { %1109 = vmatpush3.bf16.msra.mxu1 %v1221_v49 }
 0x18e   :  { %1110 = vmatprep.subr.bf16.mxu1 %v1537_v0 }
 0x18f   :  { %1129 = vmatpush3.bf16.msra.mxu0 %v1229_v57 }
 0x190   :  { %1130 = vmatprep.subr.bf16.mxu0 %v1537_v0 }
 0x191   :  { %1111 = vmatpush3.bf16.msra.mxu1 %v1222_v50 }
 0x192   :  { %1136 = vmatprep.subr.bf16.mxu1 %v1537_v0 }
 0x193   :  { %1131 = vmatpush3.bf16.msra.mxu0 %v1230_v58 }
 0x194   :  { %1113 = vmatmul.mubr.bf16.vlgmr.msra.gmra.mrb[4].mxu1 %v1732_v22 }
 0x195   :  { %1152 = vmatprep.mubr.msk.bf16.mxu1 %vm1538_vm0, %v1537_v0  ;;  %1137 = vmatpush3.bf16.msra.mxu1 %v1231_v59 }
 0x196   :  { %1138 = vmatprep.subr.bf16.mxu1 %v1537_v0 }
 0x199   :  { %1139 = vmatpush3.bf16.msra.mxu1 %v1232_v60 }
 0x19a   :  { %1140 = vmatprep.subr.bf16.mxu1 %v1537_v0 }
 0x19d   :  { %1141 = vmatpush3.bf16.msra.mxu1 %v1233_v61 }
 0x19e   :  { %1142 = vmatprep.subr.bf16.mxu1 %v1537_v0 }
 0x1a1   :  { %1143 = vmatpush3.bf16.msra.mxu1 %v1234_v62 }
 0x1a2   :  { %1144 = vmatprep.subr.bf16.mxu1 %v1537_v0 }
 0x1a5   :  { %1145 = vmatpush3.bf16.msra.mxu1 %v1235_v24 }
 0x1a6   :  { %1146 = vmatprep.subr.bf16.mxu1 %v1537_v0 }
 0x1a9   :  { %1147 = vmatpush3.bf16.msra.mxu1 %v1236_v25 }
 0x1aa   :  { %1148 = vmatprep.subr.bf16.mxu1 %v1537_v0 }
 0x1ad   :  { %1149 = vmatpush3.bf16.msra.mxu1 %v1237_v26 }
 0x1ae   :  { %1150 = vmatprep.subr.bf16.mxu1 %v1537_v0  ;;  %v994_v0 = vld [vmem:[%s1873_s8] ss:$0 sm:$0xff]  ;;  %s1540_s8 = smov [#allocation14]  }
 0x1af   :  { %s877_s25 = sshll.u32 %s1540_s8, 4  ;;  %s878_s25 = int_to_ptr.vmem [resolvable:$true] %s877_s25 }
 0x1b0   :  { %s1379_s3 = scalar_lea.vmem %s878_s25, 128  ;;  %p1384_p7 = scmp.lt.s32.totalorder %s878_s25, %s878_s25 }
 0x1b1   :  { %1151 = vmatpush3.bf16.msra.mxu1 %v1238_v29  ;;  %p1380_p6 = scmp.ne.s32.totalorder %s878_s25, %s1379_s3  ;;  %p1385_p8 = scmp.lt.s32.totalorder %s1379_s3, %s1379_s3 }
 0x1b3   :  { %p1386_p9 = por %p1385_p8, %p1384_p7 }
 0x1b5   :  { %p1387_p10 = pnand %p1386_p9, %p1380_p6 }
 0x247   :  { %v452_v9 = vpop.f32.mrb[0].mxu1  ;;  %v493_v10 = vpop.f32.mrb[4].mxu0 }
 0x248   :  { %v453_v11 = vadd.f32 %v452_v9, %v278_v6  ;;  %v494_v12 = vadd.f32 %v493_v10, %v286_v7  ;;  %v454_v13 = vpop.f32.mrb[1].mxu1  ;;  %v1094_v14 = vpop.f32.mrb[5].mxu0 }
 0x249   :  { %v455_v15 = vadd.f32 %v454_v13, %v282_v8  ;;  %v456_v16 = vpop.f32.mrb[2].mxu1  ;;  %v496_v17 = vpop.f32.mrb[6].mxu0 }
 0x24a   :  { %499 = vst [vmem:[#allocation13] sm:$0xff] %v453_v11  ;;  %v984_v18 = vmul.f32 -1.442695, %v494_v12  ;;  %v457_v19 = vpop.f32.mrb[3].mxu1  ;;  %v1095_v20 = vpop.f32.mrb[7].mxu0 }
 0x24b   :  { %v500_v21 = vmul.f32 %v455_v15, %v455_v15 }
 0x24c   :  { %1239 = vpow2.f32 %v984_v18 }
 0x24d   :  { %501 = vadd.xlane.f32.xlu0 %v500_v21 }
 0x256   :  { %v1240_v22 = vpop.eup %1239 }
 0x257   :  { %v509_v23 = vadd.f32 1.0, %v1240_v22 }
 0x259   :  { %1241 = vrcp.f32 %v509_v23 }
 0x263   :  { %v1242_v27 = vpop.eup %1241 }
 0x264   :  { %512 = vst [vmem:[#allocation14] sm:$0xff] %v1242_v27 }
 0x267   :  { %v619_v30 = vpop.f32.mrb[4].mxu1 }
 0x268   :  { %v620_v31 = vadd.f32 %v985_v28, %v619_v30  ;;  %v1114_v32 = vpop.f32.mrb[5].mxu1 }
 0x269   :  { %v622_v33 = vpop.f32.mrb[6].mxu1 }
 0x26a   :  { %v625_v34 = vmax.f32 %v620_v31, 0.0  ;;  %v1115_v35 = vpop.f32.mrb[7].mxu1 }
 0x26c   :  { %v626_v36 = vpack.c.bf16 %v625_v34, %v625_v34 }
 0x26e   :  { %1133 = vmatmul.mubr.bf16.vlgmr.msra.gmra.mrb[8].mxu0 %v626_v36 }
 0x2da   :  { %v502_v37 = vpop.xlane.xlu0 %501 }
 0x2db   :  { %v503_v38 = vmax.f32 %v502_v37, 1e-24 }
 0x2dd   :  { %1243 = vrsqrt.f32 %v503_v38 }
 0x2e7   :  { %v1244_v39 = vpop.eup %1243 }
 0x2e8   :  { %v505_v40 = vmul.f32 %v1244_v39, %v455_v15 }
 0x2ea   :  { %v750_v41 = vpack.c.bf16 %v505_v40, %v505_v40 }
 0x2ec   :  { %1153 = vmatmul.mubr.bf16.vlgmr.msra.gmra.mrb[8].mxu1 %v750_v41  ;;  %752 = vst.msk [vmem:[#allocation17] sm:$0xf] %vm751_vm1, %v750_v41 }
 0x341   :  { %v732_v42 = vpop.f32.mrb[8].mxu0 }
 0x342   :  { %v733_v43 = vadd.f32 %v994_v0, %v732_v42  ;;  %v1134_v44 = vpop.f32.mrb[9].mxu0 }
 0x343   :  { %v735_v45 = vpop.f32.mrb[10].mxu0 }
 0x344   :  { %v1135_v46 = vpop.f32.mrb[11].mxu0  ;;  %v738_v47 = vmul.f32 %v733_v43, %v733_v43 }
 0x346   :  { %739 = vadd.xlane.f32.xlu0 %v738_v47 }
 0x3bf   :  { %v853_v48 = vpop.f32.mrb[8].mxu1 }
 0x3c0   :  { %v859_v49 = vmul.f32 14.285714, %v853_v48  ;;  %v1154_v50 = vpop.f32.mrb[9].mxu1 }
 0x3c1   :  { %v856_v51 = vpop.f32.mrb[10].mxu1 }
 0x3c2   :  { %860 = vst [vmem:[#allocation20] sm:$0xff] %v859_v49  ;;  %v1155_v52 = vpop.f32.mrb[11].mxu1 }
 0x3d3   :  { %v740_v53 = vpop.xlane.xlu0 %739 }
 0x3d4   :  { %v741_v54 = vmax.f32 %v740_v53, 1e-24 }
 0x3d6   :  { %1245 = vrsqrt.f32 %v741_v54 }
 0x3e0   :  { %v1246_v55 = vpop.eup %1245 }
 0x3e1   :  { %v743_v56 = vmul.f32 %v1246_v55, %v733_v43 }
 0x3e3   :  { %v744_v57 = vmul.f32 %v743_v56, %v505_v40  ;;  %v753_v58 = vpack.c.bf16 %v743_v56, %v743_v56 }
 0x3e5   :  { %745 = vadd.xlane.f32.xlu1 %v744_v57  ;;  %754 = vst.msk [vmem:[#allocation19] sm:$0xf] %vm751_vm1, %v753_v58 }
 0x3e6   :  { %1390 = shalt.err (!%p1387_p10)
}
 0x3e7   :  { %s1391_s20 = scalar_lea.hbm %s1876_s11, 128 }
 0x3e8   :  { %p1392_p11 = scmp.ne.s32.totalorder %s1876_s11, %s1391_s20  ;;  %p1395_p12 = scmp.lt.u32.totalorder %s1391_s20, %s1876_s11 }
 0x3ea   :  { %p1397_p13 = pnand %p1395_p12, %p1392_p11 }
 0x3ec   :  { %1400 = shalt.err (!%p1397_p13)
}
 0x3ed   :  { %880 = dma.vmem_to_hbm [thread:$0]  %s878_s25, 128, %s1876_s11, [#allocation15]  }
 0x3ee   :  { %s1401_s15 = scalar_lea.vmem %s898_s27, 64  ;;  %p1406_p1 = scmp.lt.s32.totalorder %s898_s27, %s898_s27 }
 0x3ef   :  { %p1402_p0 = scmp.ne.s32.totalorder %s898_s27, %s1401_s15  ;;  %p1407_p2 = scmp.lt.s32.totalorder %s1401_s15, %s1401_s15 }
 0x3f1   :  { %p1408_p3 = por %p1407_p2, %p1406_p1 }
 0x3f3   :  { %p1409_p4 = pnand %p1408_p3, %p1402_p0 }
 0x3f5   :  { %1412 = shalt.err (!%p1409_p4)
}
 0x3f6   :  { %s1413_s9 = scalar_lea.hbm %s1878_s13, 64 }
 0x3f7   :  { %p1414_p5 = scmp.ne.s32.totalorder %s1878_s13, %s1413_s9  ;;  %p1417_p6 = scmp.lt.u32.totalorder %s1413_s9, %s1878_s13 }
 0x3f9   :  { %p1419_p7 = pnand %p1417_p6, %p1414_p5 }
 0x3fb   :  { %1422 = shalt.err (!%p1419_p7)
}
 0x3fc   :  { %900 = dma.vmem_to_hbm [thread:$0]  %s898_s27, 64, %s1878_s13, [#allocation18]  }
 0x3fd   :  { %s1542_s6 = smov [#allocation13]   ;;  %s1543_s8 = smov [#allocation16]  }
 0x3fe   :  { %s867_s23 = sshll.u32 %s1542_s6, 4  ;;  %s887_s25 = sshll.u32 %s1543_s8, 4  ;;  %s868_s23 = int_to_ptr.vmem [resolvable:$true] %s867_s23  ;;  %s888_s25 = int_to_ptr.vmem [resolvable:$true] %s887_s25 }
 0x3ff   :  { %s1423_s26 = scalar_lea.vmem %s868_s23, 128  ;;  %p1428_p9 = scmp.lt.s32.totalorder %s868_s23, %s868_s23 }
 0x400   :  { %p1424_p8 = scmp.ne.s32.totalorder %s868_s23, %s1423_s26  ;;  %p1429_p10 = scmp.lt.s32.totalorder %s1423_s26, %s1423_s26 }
 0x402   :  { %p1430_p11 = por %p1429_p10, %p1428_p9 }
 0x404   :  { %p1431_p12 = pnand %p1430_p11, %p1424_p8 }
 0x406   :  { %1434 = shalt.err (!%p1431_p12)
}
 0x407   :  { %s1435_s24 = scalar_lea.hbm %s1875_s10, 128 }
 0x408   :  { %p1436_p13 = scmp.ne.s32.totalorder %s1875_s10, %s1435_s24  ;;  %p1439_p0 = scmp.lt.u32.totalorder %s1435_s24, %s1875_s10 }
 0x40a   :  { %p1441_p1 = pnand %p1439_p0, %p1436_p13 }
 0x40c   :  { %1444 = shalt.err (!%p1441_p1)
}
 0x40d   :  { %870 = dma.vmem_to_hbm [thread:$0]  %s868_s23, 128, %s1875_s10, [#allocation4]  }
 0x40e   :  { %s1445_s30 = scalar_lea.vmem %s888_s25, 128  ;;  %p1450_p3 = scmp.lt.s32.totalorder %s888_s25, %s888_s25 }
 0x40f   :  { %p1446_p2 = scmp.ne.s32.totalorder %s888_s25, %s1445_s30  ;;  %p1451_p4 = scmp.lt.s32.totalorder %s1445_s30, %s1445_s30 }
 0x411   :  { %p1452_p5 = por %p1451_p4, %p1450_p3 }
 0x413   :  { %p1453_p6 = pnand %p1452_p5, %p1446_p2 }
 0x415   :  { %1456 = shalt.err (!%p1453_p6)
}
 0x416   :  { %s1457_s15 = scalar_lea.hbm %s1877_s12, 128 }
 0x417   :  { %p1458_p7 = scmp.ne.s32.totalorder %s1877_s12, %s1457_s15  ;;  %p1461_p8 = scmp.lt.u32.totalorder %s1457_s15, %s1877_s12 }
 0x419   :  { %p1463_p9 = pnand %p1461_p8, %p1458_p7 }
 0x41b   :  { %1466 = shalt.err (!%p1463_p9)
}
 0x41c   :  { %890 = dma.vmem_to_hbm [thread:$0]  %s888_s25, 128, %s1877_s12, [#allocation15]  }
 0x41d   :  { %s1544_s17 = smov [#allocation19]   ;;  %s1545_s11 = smov [#allocation20]  }
 0x41e   :  { %s907_s4 = sshll.u32 %s1544_s17, 4  ;;  %s919_s22 = sshll.u32 %s1545_s11, 4  ;;  %s908_s4 = int_to_ptr.vmem [resolvable:$true] %s907_s4  ;;  %s920_s22 = int_to_ptr.vmem [resolvable:$true] %s919_s22 }
 0x41f   :  { %s1467_s6 = scalar_lea.vmem %s908_s4, 64  ;;  %p1472_p11 = scmp.lt.s32.totalorder %s908_s4, %s908_s4 }
 0x420   :  { %p1468_p10 = scmp.ne.s32.totalorder %s908_s4, %s1467_s6  ;;  %p1473_p12 = scmp.lt.s32.totalorder %s1467_s6, %s1467_s6 }
 0x422   :  { %p1474_p13 = por %p1473_p12, %p1472_p11 }
 0x424   :  { %p1475_p0 = pnand %p1474_p13, %p1468_p10 }
 0x426   :  { %1478 = shalt.err (!%p1475_p0)
}
 0x427   :  { %s1479_s26 = scalar_lea.hbm %s1879_s14, 64 }
 0x428   :  { %p1480_p1 = scmp.ne.s32.totalorder %s1879_s14, %s1479_s26  ;;  %p1483_p2 = scmp.lt.u32.totalorder %s1479_s26, %s1879_s14 }
 0x42a   :  { %p1485_p3 = pnand %p1483_p2, %p1480_p1 }
 0x42c   :  { %1488 = shalt.err (!%p1485_p3)
}
 0x42d   :  { %910 = dma.vmem_to_hbm [thread:$0]  %s908_s4, 64, %s1879_s14, [#allocation18]  }
 0x42e   :  { %s1489_s28 = scalar_lea.vmem %s920_s22, 128  ;;  %p1494_p5 = scmp.lt.s32.totalorder %s920_s22, %s920_s22 }
 0x42f   :  { %p1490_p4 = scmp.ne.s32.totalorder %s920_s22, %s1489_s28  ;;  %p1495_p6 = scmp.lt.s32.totalorder %s1489_s28, %s1489_s28 }
 0x431   :  { %p1496_p7 = por %p1495_p6, %p1494_p5 }
 0x433   :  { %p1497_p8 = pnand %p1496_p7, %p1490_p4 }
 0x435   :  { %1500 = shalt.err (!%p1497_p8)
}
 0x436   :  { %s1501_s29 = scalar_lea.hbm %s1881_s16, 128 }
 0x437   :  { %p1502_p9 = scmp.ne.s32.totalorder %s1881_s16, %s1501_s29  ;;  %p1505_p10 = scmp.lt.u32.totalorder %s1501_s29, %s1881_s16 }
 0x439   :  { %p1507_p11 = pnand %p1505_p10, %p1502_p9 }
 0x43b   :  { %1510 = shalt.err (!%p1507_p11)
}
 0x43c   :  { %922 = dma.vmem_to_hbm [thread:$0]  %s920_s22, 128, %s1881_s16, [#allocation21]   ;;  %vm748_vm2 = vcmask 7168  }
 0x43d   :  { %s1886_s9 = sld [smem:[#allocation31_spill]] }
 0x472   :  { %v746_v59 = vpop.xlane.xlu1 %745 }
 0x473   :  { %v747_v60 = vmul.f32 14.285714, %v746_v59 }
 0x475   :  { %749 = vst.msk [vmem:[%s1886_s9] sm:$0xff] %vm748_vm2, %v747_v60 }
 0x476   :  { %1519 = dma.done.wait [#allocation4], 128  }
 0x477   :  { %1520 = vsyncadd [#allocation4], 4294967168 }
 0x478   :  { %1521 = dma.done.wait [#allocation15], 256  }
 0x479   :  { %1522 = vsyncadd [#allocation15], 4294967040 }
 0x47a   :  { %1523 = dma.done.wait [#allocation18], 128  }
 0x47b   :  { %1524 = vsyncadd [#allocation18], 4294967168 }
 0x47c   :  { %1525 = dma.done.wait [#allocation21], 128  }
 0x47d   :  { %1526 = vsyncadd [#allocation21], 4294967168 }
 0x47e   :  { %943 = vsyncpa [#allocation3], 1 }
 0x47f   :  { %944 = vsyncpa [#allocation6], 1 }
 0x480   :  { %945 = vsyncpa [#allocation9], 1 }
 0x481   :  { %946 = vsyncpa [#allocation12], 1 }
 0x482   :  { %947 = vsyncpa [#allocation4], 1 }
 0x483   :  { %948 = vsyncpa [#allocation15], 1 }
 0x484   :  { %949 = vsyncpa [#allocation18], 1 }
 0x485   :  { %950 = vsyncpa [#allocation21], 1 }

</bundles_post_ra>
